<compile_context>
chip_gen: v6e
topology: v6e:2x2x1
jax: 0.10.0
libtpu: 0.0.40
codegen_flags: <defaults>
</compile_context>

<pallas_src>
import jax
import jax.numpy as jnp
from jax.experimental import pallas as pl
from jax.experimental.pallas import tpu as pltpu


def _make_kernel(hw, hwp, bb):
    """Builds the kernel body for true spatial size `hw`, padded size `hwp`,
    and `bb` images per grid step."""
    inv_hw = 1.0 / float(hw)
    need_mask = hwp != hw

    def kernel(x_ref, w1t_ref, w2t_ref, o_ref):
        x = x_ref[...]                                    # (bb, C, HWp) f32

        # Global average / max pooling over the spatial (lane) axis.
        avg = jnp.sum(x, axis=-1) * inv_hw                # (bb, C)  zero-pad safe
        if need_mask:
            lane = jax.lax.broadcasted_iota(jnp.int32, x.shape, 2)
            x_for_max = jnp.where(lane < hw, x, -jnp.inf)
        else:
            x_for_max = x
        mx = jnp.max(x_for_max, axis=-1)                  # (bb, C)

        # Fused shared-MLP: one matmul pair for both branches of all bb images.
        pooled = jnp.concatenate([avg, mx], axis=0)       # (2*bb, C)
        h = jnp.dot(pooled, w1t_ref[...],
                    preferred_element_type=jnp.float32)   # (2*bb, hidden)
        h = jnp.maximum(h, 0.0)                           # ReLU
        y = jnp.dot(h, w2t_ref[...],
                    preferred_element_type=jnp.float32)   # (2*bb, C)
        v = jax.nn.sigmoid(y[:bb] + y[bb:])               # (bb, C)

        # Re-scale: lane-broadcast of each channel's gate over its spatial slab.
        o_ref[...] = x * v[:, :, None]

    return kernel


def channel_attention_fc(x, w1, w2, *, block_bytes_target=2 << 20):
    """x: (B, C, H, W) float32.
    w1: (C//ratio, C), w2: (C, C//ratio) -- PyTorch nn.Linear weight layout (no bias)."""
    b, c, h, w = x.shape
    hw = h * w
    hidden = w1.shape[0]

    # Lane-dense spatial axis: pad to a multiple of 128 (unmasked stores).
    hwp = ((hw + 127) // 128) * 128
    x_flat = x.reshape(b, c, hw)
    if hwp != hw:
        x_flat = jnp.pad(x_flat, ((0, 0), (0, 0), (0, hwp - hw)))

    # Pick the largest divisor of B whose block stays within the byte budget.
    per_img_bytes = c * hwp * 4
    bb = 1
    for d in range(1, b + 1):
        if b % d == 0 and d * per_img_bytes <= block_bytes_target:
            bb = d
    block_bytes = bb * per_img_bytes

    # Weights in MXU-canonical orientation (tiny, one-time host transpose;
    # they stay VMEM-resident across all grid steps).
    w1t = jnp.asarray(w1).T                               # (C, hidden)
    w2t = jnp.asarray(w2).T                               # (hidden, C)

    # VMEM budget: double-buffered in + out blocks plus weights, with headroom.
    vmem_limit = min(48 << 20, max(32 << 20, 4 * block_bytes + (2 << 20)))

    kernel = _make_kernel(hw, hwp, bb)

    out = pl.pallas_call(
        kernel,
        out_shape=jax.ShapeDtypeStruct((b, c, hwp), x.dtype),
        grid_spec=pltpu.PrefetchScalarGridSpec(
            num_scalar_prefetch=0,
            grid=(b // bb,),
            in_specs=[
                pl.BlockSpec((bb, c, hwp), lambda i: (i, 0, 0)),
                pl.BlockSpec((c, hidden), lambda i: (0, 0)),
                pl.BlockSpec((hidden, c), lambda i: (0, 0)),
            ],
            out_specs=pl.BlockSpec((bb, c, hwp), lambda i: (i, 0, 0)),
        ),
        compiler_params=pltpu.CompilerParams(
            dimension_semantics=("parallel",),
            vmem_limit_bytes=int(vmem_limit)),
    )(x_flat, w1t, w2t)

    out = out[:, :, :hw]
    return out.reshape(b, c, h, w)


def reference(x, w1, w2):
    avg = jnp.mean(x, axis=(2, 3))                        # (B, C)
    mx = jnp.max(x, axis=(2, 3))                          # (B, C)

    def fc(v):
        return jnp.maximum(v @ w1.T, 0.0) @ w2.T

    v = jax.nn.sigmoid(fc(avg) + fc(mx))                  # (B, C)
    return x * v[:, :, None, None]


def _run_case(key, b, c, h, w, ratio):
    hidden = c // ratio
    kx, k1, k2 = jax.random.split(key, 3)
    x = jax.random.normal(kx, (b, c, h, w), dtype=jnp.float32)
    # nn.Linear default-like init: uniform(-1/sqrt(fan_in), 1/sqrt(fan_in)).
    b1 = 1.0 / jnp.sqrt(jnp.float32(c))
    b2 = 1.0 / jnp.sqrt(jnp.float32(hidden))
    w1 = jax.random.uniform(k1, (hidden, c), jnp.float32, -b1, b1)   # Linear(C -> C//ratio)
    w2 = jax.random.uniform(k2, (c, hidden), jnp.float32, -b2, b2)   # Linear(C//ratio -> C)

    out = channel_attention_fc(x, w1, w2)
    out = jax.block_until_ready(out)
    ref = reference(x, w1, w2)
    assert out.shape == (b, c, h, w)
    err = jnp.max(jnp.abs(out - ref))
    assert jnp.allclose(out, ref, atol=1e-5, rtol=1e-5), f"max abs err {err}"
    return x.shape


if __name__ == "__main__":
    key = jax.random.PRNGKey(0)
    k0, k1 = jax.random.split(key, 2)

    # Main case: HW already a multiple of 128 (16x16=256) -> no padding path.
    _run_case(k0, b=2, c=16, h=16, w=16, ratio=4)
    # Secondary case exercising the padded/masked path: 7x7=49 -> padded to 128.
    _run_case(k1, b=4, c=16, h=7, w=7, ratio=4)

    print("KERNEL_OK")
</pallas_src>

<mosaic_0001>
module attributes {stable_mosaic.version = 11 : i64} {
  func.func @kernel(%arg0: i32, %arg1: memref<2x16x256xf32, #tpu.memory_space<vmem>>, %arg2: memref<16x4xf32, #tpu.memory_space<vmem>>, %arg3: memref<4x16xf32, #tpu.memory_space<vmem>>, %arg4: memref<2x16x256xf32, #tpu.memory_space<vmem>>) attributes {dimension_semantics = [#tpu.dimension_semantics<parallel>], iteration_bounds = array<i64: 1>, scalar_prefetch = 0 : i64, scratch_operands = 0 : i64, tpu.core_type = #tpu.core_type<tc>, window_params = [{transform_indices = @transform_0, window_bounds = array<i64: 2, 16, 256>}, {pipeline_mode = #tpu.pipeline_mode<synchronous>, transform_indices = @transform_1, window_bounds = array<i64: 16, 4>}, {pipeline_mode = #tpu.pipeline_mode<synchronous>, transform_indices = @transform_2, window_bounds = array<i64: 4, 16>}, {transform_indices = @transform_3, window_bounds = array<i64: 2, 16, 256>}]} {
    %c0 = arith.constant 0 : index
    %c0_0 = arith.constant 0 : index
    %c0_1 = arith.constant 0 : index
    %0 = vector.load %arg1[%c0, %c0_0, %c0_1] : memref<2x16x256xf32, #tpu.memory_space<vmem>>, vector<2x16x256xf32>
    %cst = arith.constant dense<0.000000e+00> : vector<2x16xf32>
    %1 = vector.multi_reduction <add>, %0, %cst [2] : vector<2x16x256xf32> to vector<2x16xf32>
    %cst_2 = arith.constant 3.906250e-03 : f32
    %2 = vector.broadcast %cst_2 : f32 to vector<2x16xf32>
    %3 = arith.mulf %1, %2 : vector<2x16xf32>
    %cst_3 = arith.constant dense<0xFF800000> : vector<2x16xf32>
    %4 = vector.multi_reduction <maximumf>, %0, %cst_3 [2] : vector<2x16x256xf32> to vector<2x16xf32>
    %5 = tpu.concatenate %3, %4 in 0 : vector<2x16xf32>, vector<2x16xf32> -> vector<4x16xf32>
    %c0_4 = arith.constant 0 : index
    %c0_5 = arith.constant 0 : index
    %6 = vector.load %arg2[%c0_4, %c0_5] : memref<16x4xf32, #tpu.memory_space<vmem>>, vector<16x4xf32>
    %cst_6 = arith.constant dense<0.000000e+00> : vector<4x4xf32>
    %7 = tpu.matmul %5, %6, %cst_6 {dimension_numbers = #tpu.dot_dimension_numbers<[1], [0], [0], [1], [0, 0, 1, 1], [], []>} : vector<4x16xf32>, vector<16x4xf32>, vector<4x4xf32> -> vector<4x4xf32>
    %cst_7 = arith.constant 0.000000e+00 : f32
    %8 = vector.broadcast %cst_7 : f32 to vector<4x4xf32>
    %9 = arith.maximumf %7, %8 : vector<4x4xf32>
    %c0_8 = arith.constant 0 : index
    %c0_9 = arith.constant 0 : index
    %10 = vector.load %arg3[%c0_8, %c0_9] : memref<4x16xf32, #tpu.memory_space<vmem>>, vector<4x16xf32>
    %cst_10 = arith.constant dense<0.000000e+00> : vector<4x16xf32>
    %11 = tpu.matmul %9, %10, %cst_10 {dimension_numbers = #tpu.dot_dimension_numbers<[1], [0], [0], [1], [0, 0, 1, 1], [], []>} : vector<4x4xf32>, vector<4x16xf32>, vector<4x16xf32> -> vector<4x16xf32>
    %12 = vector.extract_strided_slice %11 {offsets = [0, 0], sizes = [2, 16], strides = [1, 1]} : vector<4x16xf32> to vector<2x16xf32>
    %13 = vector.extract_strided_slice %11 {offsets = [2, 0], sizes = [2, 16], strides = [1, 1]} : vector<4x16xf32> to vector<2x16xf32>
    %14 = arith.addf %12, %13 : vector<2x16xf32>
    %15 = arith.negf %14 : vector<2x16xf32>
    %16 = math.exp %15 : vector<2x16xf32>
    %cst_11 = arith.constant 1.000000e+00 : f32
    %17 = vector.broadcast %cst_11 : f32 to vector<2x16xf32>
    %18 = arith.addf %17, %16 : vector<2x16xf32>
    %19 = arith.divf %17, %18 : vector<2x16xf32>
    %20 = vector.shape_cast %19 : vector<2x16xf32> to vector<2x16x1xf32>
    %21 = vector.broadcast %20 : vector<2x16x1xf32> to vector<2x16x256xf32>
    %22 = arith.mulf %0, %21 : vector<2x16x256xf32>
    %c0_12 = arith.constant 0 : index
    %c0_13 = arith.constant 0 : index
    %c0_14 = arith.constant 0 : index
    %23 = vector.load %arg4[%c0_12, %c0_13, %c0_14] : memref<2x16x256xf32, #tpu.memory_space<vmem>>, vector<2x16x256xf32>
    tpu.vector_store %arg4[%c0_12, %c0_13, %c0_14], %22 {strides = array<i32>} : memref<2x16x256xf32, #tpu.memory_space<vmem>>, vector<2x16x256xf32>,
    return
  }
  func.func @transform_0(%arg0: i32) -> (i32, i32, i32) {
    %c0_i32 = arith.constant 0 : i32
    %c0_i32_0 = arith.constant 0 : i32
    %c0_i32_1 = arith.constant 0 : i32
    return %arg0, %c0_i32, %c0_i32_0 : i32, i32, i32
  }
  func.func @transform_1(%arg0: i32) -> (i32, i32) {
    %c0_i32 = arith.constant 0 : i32
    %c0_i32_0 = arith.constant 0 : i32
    %c0_i32_1 = arith.constant 0 : i32
    return %c0_i32, %c0_i32_0 : i32, i32
  }
  func.func @transform_2(%arg0: i32) -> (i32, i32) {
    %c0_i32 = arith.constant 0 : i32
    %c0_i32_0 = arith.constant 0 : i32
    %c0_i32_1 = arith.constant 0 : i32
    return %c0_i32, %c0_i32_0 : i32, i32
  }
  func.func @transform_3(%arg0: i32) -> (i32, i32, i32) {
    %c0_i32 = arith.constant 0 : i32
    %c0_i32_0 = arith.constant 0 : i32
    %c0_i32_1 = arith.constant 0 : i32
    return %arg0, %c0_i32, %c0_i32_0 : i32, i32, i32
  }
}

</mosaic_0001>

<bundles_post_ra>
// kernel: tpu_custom_call.1
= control target key start
LH: loop header
LB: loop body
LE: loop exit
PB: predicated region body
PF: predicated region fallthrough
CT: control target
= control target key end

     0   :  { %8 = vsyncpa [#allocation3], 0  ;;  %s504_s0 = inlined_call_operand.hbm [shape: f32[2,16,256], index: 0, kind: input, shape index: {}]   ;;  %s505_s1 = inlined_call_operand.vmem [shape: f32[16,4], index: 1, kind: input, shape index: {}]   ;;  %s506_s2 = inlined_call_operand.vmem [shape: f32[4,16], index: 2, kind: input, shape index: {}]   ;;  %s507_s3 = inlined_call_operand.hbm [shape: f32[2,16,256], index: 3, kind: output, shape index: {}]  }
   0x1   :  { %9 = vsyncpa [#allocation4], 0  ;;  %s417_s12 = smov [#allocation2]  }
   0x2   :  { %s15_s13 = sshll.u32 %s417_s12, 4  ;;  %s16_s13 = int_to_ptr.vmem [resolvable:$true] %s15_s13 }
   0x3   :  { %s381_s14 = scalar_lea.vmem %s16_s13, 1024  ;;  %p386_p1 = scmp.lt.s32.totalorder %s16_s13, %s16_s13 }
   0x4   :  { %p382_p0 = scmp.ne.s32.totalorder %s16_s13, %s381_s14  ;;  %p387_p2 = scmp.lt.s32.totalorder %s381_s14, %s381_s14 }
   0x6   :  { %p388_p3 = por %p387_p2, %p386_p1 }
   0x8   :  { %p389_p4 = pnand %p388_p3, %p382_p0 }
   0xa   :  { %392 = shalt.err (!%p389_p4)
}
   0xb   :  { %s418_s15 = smov 256   ;;  %s419_s16 = smov 16  }
   0xc   :  { %21 = dma.hbm_to_vmem [thread:$0]  %s504_s0, 1024, %s16_s13, [#allocation3], %s418_s15, %s418_s15, %s419_s16  }
   0xd   :  { %413 = dma.done.wait [#allocation3], 1024  }
   0xe   :  { %414 = vsyncadd [#allocation3], 4294966272  ;;  %v449_v0 = vld [vmem:[#allocation2 + $0x20] sm:$0xff]  ;;  %v451_v1 = vld [vmem:[#allocation2 + $0x28] sm:$0xff]  ;;  %v420_v16 = vmov 0.0   ;;  %vm421_vm0 = vmmov 0   ;;  %v69_v19 = vlaneseq }
   0xf   :  { %v453_v2 = vld [vmem:[#allocation2] sm:$0xff]  ;;  %v43_v3 = vadd.f32 %v451_v1, %v449_v0  ;;  %v457_v4 = vld [vmem:[#allocation2 + $0x8] sm:$0xff]  ;;  %v459_v5 = vld [vmem:[#allocation2 + $0x30] sm:$0xff]  ;;  %v59_v15 = vmax.f32 %v449_v0, %v451_v1  ;;  %351 = vmatprep.subr.mxu0 %v420_v16  ;;  %358 = vmatprep.subr.mxu1 %v420_v16  ;;  %vm80_vm1 = vcmask 130112   ;;  %vm91_vm2 = vcmask 1041409  }
  0x10   :  { %v461_v6 = vld [vmem:[#allocation2 + $0x38] sm:$0xff]  ;;  %v37_v7 = vadd.f32 %v457_v4, %v453_v2  ;;  %v465_v8 = vld [vmem:[#allocation2 + $0x10] sm:$0xff]  ;;  %v53_v13 = vmax.f32 %v453_v2, %v457_v4  ;;  %v122_v17 = vld [vmem:[%s505_s1 + $0x8] sm:$0xff]  ;;  %355 = vmatprep.mubr.msk.f32.mxu0 %vm421_vm0, %v420_v16  ;;  %360 = vmatprep.mubr.msk.f32.mxu1 %vm421_vm0, %v420_v16  ;;  %v70_v20 = vand.u32 127, %v69_v19  ;;  %v72_v24 = vshrl.u32 %v69_v19, 7 }
  0x11   :  { %v467_v9 = vld [vmem:[#allocation2 + $0x18] sm:$0xff]  ;;  %44 = vadd.xlane.f32.xlu1 %v43_v3  ;;  %v46_v10 = vadd.f32 %v461_v6, %v459_v5  ;;  %v62_v14 = vmax.f32 %v459_v5, %v461_v6  ;;  %352 = vmatpush3.msra.mxu0 %v122_v17  ;;  %v121_v18 = vld [vmem:[%s505_s1] sm:$0xff]  ;;  %vm116_vm3 = vcmask 1043459   ;;  %vm119_vm4 = vcmask 1041408  }
  0x12   :  { %38 = vadd.xlane.f32.xlu0 %v37_v7  ;;  %v40_v11 = vadd.f32 %v467_v9, %v465_v8  ;;  %v56_v12 = vmax.f32 %v465_v8, %v467_v9  ;;  %353 = vmatprep.subr.mxu0 %v420_v16  ;;  %v75_v23 = vadd.s32 4294967288, %v70_v20  ;;  %v73_v30 = vsub.s32 %v70_v20, %v72_v24  ;;  %v198_v52 = vld [vmem:[%s506_s2] sm:$0xf]  ;;  %s422_s2 = smov [#allocation5]  }
  0x13   :  { %354 = vmatpush3.msra.mxu0 %v121_v18  ;;  %vm123_vm5 = vcmask 130048   ;;  %vm203_vm6 = vcmask 1043456   ;;  %vm199_vm7 = vcmask 31744   ;;  %v289_v63 = vsub.s32 0, %v72_v24  ;;  %s330_s23 = sshll.u32 %s422_s2, 4  ;;  %s331_s23 = int_to_ptr.vmem [resolvable:$true] %s330_s23 }
  0x14   :  { %v78_v27 = vsub.s32 %v75_v23, %v72_v24  ;;  %359 = vmatpush3.msk.msra.mxu1 %vm203_vm6, %v198_v52  ;;  %s393_s24 = scalar_lea.vmem %s331_s23, 1024  ;;  %p398_p6 = scmp.lt.s32.totalorder %s331_s23, %s331_s23 }
  0x15   :  { %47 = vadd.xlane.f32.xlu1 %v46_v10  ;;  %v300_v10 = vsub.s32 1, %v72_v24  ;;  %p394_p5 = scmp.ne.s32.totalorder %s331_s23, %s393_s24  ;;  %p399_p7 = scmp.lt.s32.totalorder %s393_s24, %s393_s24 }
  0x16   :  { %41 = vadd.xlane.f32.xlu0 %v40_v11 }
  0x17   :  { %p400_p8 = por %p399_p7, %p398_p6 }
  0x19   :  { %57 = vmax.xlane.f32.xlu1 %v56_v12  ;;  %p401_p9 = pnand %p400_p8, %p394_p5 }
  0x1a   :  { %54 = vmax.xlane.f32.xlu0 %v53_v13 }
  0x1d   :  { %63 = vmax.xlane.f32.xlu1 %v62_v14 }
  0x1e   :  { %60 = vmax.xlane.f32.xlu0 %v59_v15 }
  0x9a   :  { %v45_v21 = vpop.xlane.xlu1 %44 }
  0x9b   :  { %v39_v22 = vpop.xlane.xlu0 %38  ;;  %v51_v31 = vmul.f32 0.00390625, %v45_v21 }
  0x9c   :  { %v49_v32 = vmul.f32 0.00390625, %v39_v22 }
  0x9d   :  { %v85_v37 = vrot.slane %v51_v31, %v73_v30 }
  0x9e   :  { %v48_v25 = vpop.xlane.xlu1 %47  ;;  %v74_v38 = vrot.slane %v49_v32, %v73_v30 }
  0x9f   :  { %v42_v26 = vpop.xlane.xlu0 %41  ;;  %v52_v28 = vmul.f32 0.00390625, %v48_v25 }
  0xa0   :  { %v50_v29 = vmul.f32 0.00390625, %v42_v26 }
  0xa1   :  { %v89_v35 = vrot.slane %v52_v28, %v78_v27 }
  0xa2   :  { %v58_v33 = vpop.xlane.xlu1 %57  ;;  %v79_v36 = vrot.slane %v50_v29, %v78_v27 }
  0xa3   :  { %v55_v34 = vpop.xlane.xlu0 %54  ;;  %v105_v39 = vrot.slane %v58_v33, %v78_v27  ;;  %v90_v44 = vsel %vm80_vm1, %v89_v35, %v85_v37 }
  0xa4   :  { %v101_v40 = vrot.slane %v55_v34, %v73_v30  ;;  %v81_v45 = vsel %vm80_vm1, %v79_v36, %v74_v38 }
  0xa5   :  { %v92_v49 = vsel %vm91_vm2, %v90_v44, %v81_v45 }
  0xa6   :  { %v64_v41 = vpop.xlane.xlu1 %63  ;;  %v106_v47 = vsel %vm80_vm1, %v105_v39, %v101_v40 }
  0xa7   :  { %v114_v42 = vrot.slane %v64_v41, %v78_v27  ;;  %v61_v43 = vpop.xlane.xlu0 %60 }
  0xa8   :  { %v110_v46 = vrot.slane %v61_v43, %v73_v30 }
  0xaa   :  { %v115_v48 = vsel %vm80_vm1, %v114_v42, %v110_v46 }
  0xab   :  { %v117_v50 = vsel %vm116_vm3, %v115_v48, %v106_v47 }
  0xac   :  { %v120_v51 = vsel %vm119_vm4, %v92_v49, %v117_v50 }
  0xad   :  { %356 = vmatmul.mubr.msk.f32.vlgmr.msra.gmra.mxu0 %vm123_vm5, %v120_v51 }
 0x16d   :  { %v193_v53 = vpop.f32.mrf.mxu0 }
 0x16e   :  { %v197_v54 = vmax.f32 %v193_v53, 0.0 }
 0x16f   :  { %v357_v55 = vpop.f32.mrf.mxu0 }
 0x170   :  { %361 = vmatmul.mubr.msk.f32.vlgmr.msra.gmra.mxu1 %vm199_vm7, %v197_v54 }
 0x230   :  { %v273_v56 = vpop.f32.mrf.mxu1 }
 0x231   :  { %v278_v57 = vrot.slane %v273_v56, 2 }
 0x232   :  { %v362_v58 = vpop.f32.mrf.mxu1 }
 0x233   :  { %v280_v59 = vadd.f32 %v278_v57, %v273_v56 }
 0x235   :  { %v345_v60 = vmul.f32 -1.442695, %v280_v59 }
 0x237   :  { %369 = vpow2.f32 %v345_v60 }
 0x244   :  { %v370_v61 = vpop.eup %369 }
 0x245   :  { %v284_v62 = vadd.f32 1.0, %v370_v61 }
 0x247   :  { %371 = vrcp.f32 %v284_v62 }
 0x254   :  { %v372_v3 = vpop.eup %371 }
 0x255   :  { %v290_v7 = vrot.slane %v372_v3, %v289_v63  ;;  %v301_v11 = vrot.slane %v372_v3, %v300_v10 }
 0x257   :  { %296 = vbcast.lane.b32.xlu1 %v290_v7, 264  ;;  %292 = vbcast.lane.b32.xlu0 %v290_v7, 256 }
 0x25b   :  { %303 = vbcast.lane.b32.xlu1 %v301_v11, 256 }
 0x25f   :  { %307 = vbcast.lane.b32.xlu1 %v301_v11, 264 }
 0x2c9   :  { %v297_v12 = vpop.permute.xlu1 %296  ;;  %v293_v13 = vpop.permute.xlu0 %292 }
 0x2ca   :  { %v311_v14 = vmul.f32 %v297_v12, %v465_v8  ;;  %v312_v15 = vmul.f32 %v297_v12, %v467_v9  ;;  %v309_v16 = vmul.f32 %v293_v13, %v453_v2  ;;  %v310_v17 = vmul.f32 %v293_v13, %v457_v4 }
 0x2cc   :  { %319 = vst [vmem:[#allocation5 + $0x10] sm:$0xff] %v311_v14  ;;  %320 = vst [vmem:[#allocation5 + $0x18] sm:$0xff] %v312_v15 }
 0x2cd   :  { %317 = vst [vmem:[#allocation5] sm:$0xff] %v309_v16  ;;  %318 = vst [vmem:[#allocation5 + $0x8] sm:$0xff] %v310_v17  ;;  %v304_v18 = vpop.permute.xlu1 %303 }
 0x2ce   :  { %v313_v19 = vmul.f32 %v304_v18, %v449_v0  ;;  %v314_v20 = vmul.f32 %v304_v18, %v451_v1 }
 0x2d0   :  { %321 = vst [vmem:[#allocation5 + $0x20] sm:$0xff] %v313_v19  ;;  %322 = vst [vmem:[#allocation5 + $0x28] sm:$0xff] %v314_v20 }
 0x2d1   :  { %v308_v8 = vpop.permute.xlu1 %307 }
 0x2d2   :  { %v315_v9 = vmul.f32 %v308_v8, %v459_v5  ;;  %v316_v2 = vmul.f32 %v308_v8, %v461_v6 }
 0x2d4   :  { %323 = vst [vmem:[#allocation5 + $0x30] sm:$0xff] %v315_v9  ;;  %324 = vst [vmem:[#allocation5 + $0x38] sm:$0xff] %v316_v2 }
 0x2d5   :  { %404 = shalt.err (!%p401_p9)
}
 0x2d6   :  { %336 = dma.vmem_to_hbm [thread:$0]  %s331_s23, 1024, %s507_s3, [#allocation4], %s418_s15, %s418_s15, %s419_s16  }
 0x2d7   :  { %415 = dma.done.wait [#allocation4], 1024  }
 0x2d8   :  { %416 = vsyncadd [#allocation4], 4294966272 }
 0x2d9   :  { %340 = vsyncpa [#allocation3], 1 }
 0x2da   :  { %341 = vsyncpa [#allocation4], 1 }

</bundles_post_ra>
